<compile_context>
chip_gen: v5e
topology: v5e:2x2
jax: 0.10.0
libtpu: 0.0.40
codegen_flags: <defaults>
</compile_context>

<pallas_src>
import math

import jax
import jax.numpy as jnp
from jax.experimental import pallas as pl
from jax.experimental.pallas import tpu as pltpu


# ---------------------------------------------------------------------------
# Kernel
# ---------------------------------------------------------------------------
def dct_pool_kernel(x_ref, w_ref, o_ref):
    """One batch chunk: x_ref (Nb, C, HW), w_ref (C, HW), o_ref (Nb, 1, C)."""
    x = x_ref[...].astype(jnp.float32)      # (Nb, C, HW)  lane-dense loads
    w = w_ref[...].astype(jnp.float32)      # (C, HW)      resident filter
    y = x * w[None, :, :]                   # VPU elementwise multiply (f32)
    # Spatial (lane-axis) reduction on the XLU.  At these sizes the reduce is
    # far from the bottleneck (the kernel is HBM-bandwidth bound on x); for
    # very large H*W this could be moved onto the MXU via a dot against a
    # ones(HW, 1) vector to free the XLU slot.
    o_ref[...] = jnp.sum(y, axis=-1)[:, None, :].astype(o_ref.dtype)  # (Nb,1,C)


# ---------------------------------------------------------------------------
# Wrapper
# ---------------------------------------------------------------------------
def _pick_block_n(n, per_image_bytes, target_bytes=4 << 20):
    """Largest divisor of n whose input block stays under target_bytes, while
    keeping >= 2 grid steps when n >= 2 (so both TensorCores on v7x get work)."""
    cap = max(1, target_bytes // max(per_image_bytes, 1))
    if n >= 2:
        cap = min(cap, n // 2)
    cap = max(cap, 1)
    best = 1
    for d in range(1, n + 1):
        if n % d == 0 and d <= cap:
            best = d
    return best


def multispectral_dct(x, weight, *, block_n=None):
    """x: (N, C, H, W), weight: (C, H, W) -> (N, C)."""
    n, c, h, w = x.shape
    assert weight.shape == (c, h, w)
    hw = h * w

    # Lane-dense views: HW (e.g. 256 for 16x16) sits on the lane axis.
    x2 = x.reshape(n, c, hw)
    w2 = weight.reshape(c, hw)

    if block_n is None:
        block_n = _pick_block_n(n, c * hw * x2.dtype.itemsize)
    assert n % block_n == 0
    grid = (n // block_n,)

    flops = 2 * n * c * hw
    bytes_accessed = (x2.size * x2.dtype.itemsize
                      + w2.size * w2.dtype.itemsize
                      + n * c * x.dtype.itemsize)

    out = pl.pallas_call(
        dct_pool_kernel,
        out_shape=jax.ShapeDtypeStruct((n, 1, c), x.dtype),
        grid_spec=pltpu.PrefetchScalarGridSpec(
            num_scalar_prefetch=0,
            grid=grid,
            in_specs=[
                # (Nb, C, HW): last two block dims equal the full array dims,
                # so the spec is legal for any C; HW is a multiple of 128 for
                # the canonical 16x16 tile (and still legal otherwise since it
                # equals the full dim).
                pl.BlockSpec((block_n, c, hw), lambda i: (i, 0, 0)),
                # Shared DCT filter: constant block index -> DMA'd once,
                # resident in VMEM across all grid steps.
                pl.BlockSpec((c, hw), lambda i: (0, 0)),
            ],
            out_specs=pl.BlockSpec((block_n, 1, c), lambda i: (i, 0, 0)),
        ),
        compiler_params=pltpu.CompilerParams(dimension_semantics=("parallel",)),
        cost_estimate=pl.CostEstimate(
            flops=flops, transcendentals=0, bytes_accessed=bytes_accessed),
    )(x2, w2)
    return out.reshape(n, c)


# ---------------------------------------------------------------------------
# DCT filter construction (mirrors MultiSpectralDCTLayer.get_dct_filter)
# ---------------------------------------------------------------------------
def _dct_basis(pos, freq, POS):
    r = jnp.cos(jnp.pi * float(freq) * (pos + 0.5) / float(POS)) / math.sqrt(POS)
    if freq == 0:
        return r
    return r * math.sqrt(2.0)


def get_dct_filter(height, width, mapper_x, mapper_y, channel):
    assert len(mapper_x) == len(mapper_y)
    assert channel % len(mapper_x) == 0
    c_part = channel // len(mapper_x)
    tx = jnp.arange(height, dtype=jnp.float32)
    ty = jnp.arange(width, dtype=jnp.float32)
    parts = []
    for u_x, v_y in zip(mapper_x, mapper_y):
        f = _dct_basis(tx, u_x, height)[:, None] * _dct_basis(ty, v_y, width)[None, :]
        parts.append(jnp.broadcast_to(f[None], (c_part, height, width)))
    return jnp.concatenate(parts, axis=0)          # (C, H, W)


def multispectral_dct_ref(x, weight):
    """Pure-JAX reference mirroring the torch forward."""
    return jnp.sum(x * weight[None], axis=(2, 3))  # (N, C)


# ---------------------------------------------------------------------------
# Self-test
# ---------------------------------------------------------------------------
if __name__ == "__main__":
    # Small shapes consistent with MultiSpectralDCTLayer:
    # channel % num_freq == 0, mapper entries < H, W.
    N, C, H, W = 2, 4, 16, 16
    mapper_x = [0, 2]
    mapper_y = [0, 1]

    key = jax.random.PRNGKey(0)
    x = jax.random.normal(key, (N, C, H, W), dtype=jnp.float32)
    weight = get_dct_filter(H, W, mapper_x, mapper_y, C)

    out = multispectral_dct(x, weight)
    out = jax.block_until_ready(out)

    ref = multispectral_dct_ref(x, weight)
    assert out.shape == (N, C)
    assert jnp.allclose(out, ref, atol=1e-4, rtol=1e-5), "mismatch vs reference"

    print("KERNEL_OK")
</pallas_src>

<mosaic_0001>
module attributes {stable_mosaic.version = 11 : i64} {
  func.func @dct_pool_kernel(%arg0: i32, %arg1: memref<1x4x256xf32, #tpu.memory_space<vmem>>, %arg2: memref<4x256xf32, #tpu.memory_space<vmem>>, %arg3: memref<1x1x4xf32, #tpu.memory_space<vmem>>) attributes {dimension_semantics = [#tpu.dimension_semantics<parallel>], iteration_bounds = array<i64: 2>, scalar_prefetch = 0 : i64, scratch_operands = 0 : i64, tpu.core_type = #tpu.core_type<tc>, window_params = [{transform_indices = @transform_0, window_bounds = array<i64: 1, 4, 256>}, {pipeline_mode = #tpu.pipeline_mode<synchronous>, transform_indices = @transform_1, window_bounds = array<i64: 4, 256>}, {transform_indices = @transform_2, window_bounds = array<i64: 1, 1, 4>}]} {
    %c0 = arith.constant 0 : index
    %c0_0 = arith.constant 0 : index
    %c0_1 = arith.constant 0 : index
    %0 = vector.load %arg1[%c0, %c0_0, %c0_1] : memref<1x4x256xf32, #tpu.memory_space<vmem>>, vector<1x4x256xf32>
    %c0_2 = arith.constant 0 : index
    %c0_3 = arith.constant 0 : index
    %1 = vector.load %arg2[%c0_2, %c0_3] : memref<4x256xf32, #tpu.memory_space<vmem>>, vector<4x256xf32>
    %2 = vector.shape_cast %1 : vector<4x256xf32> to vector<1x4x256xf32>
    %3 = arith.mulf %0, %2 : vector<1x4x256xf32>
    %cst = arith.constant dense<0.000000e+00> : vector<1x4xf32>
    %4 = vector.multi_reduction <add>, %3, %cst [2] : vector<1x4x256xf32> to vector<1x4xf32>
    %5 = vector.shape_cast %4 : vector<1x4xf32> to vector<1x1x4xf32>
    %c0_4 = arith.constant 0 : index
    %c0_5 = arith.constant 0 : index
    %c0_6 = arith.constant 0 : index
    %6 = vector.load %arg3[%c0_4, %c0_5, %c0_6] : memref<1x1x4xf32, #tpu.memory_space<vmem>>, vector<1x1x4xf32>
    tpu.vector_store %arg3[%c0_4, %c0_5, %c0_6], %5 {strides = array<i32>} : memref<1x1x4xf32, #tpu.memory_space<vmem>>, vector<1x1x4xf32>,
    return
  }
  func.func @transform_0(%arg0: i32) -> (i32, i32, i32) {
    %c0_i32 = arith.constant 0 : i32
    %c0_i32_0 = arith.constant 0 : i32
    %c0_i32_1 = arith.constant 0 : i32
    return %arg0, %c0_i32, %c0_i32_0 : i32, i32, i32
  }
  func.func @transform_1(%arg0: i32) -> (i32, i32) {
    %c0_i32 = arith.constant 0 : i32
    %c0_i32_0 = arith.constant 0 : i32
    %c0_i32_1 = arith.constant 0 : i32
    return %c0_i32, %c0_i32_0 : i32, i32
  }
  func.func @transform_2(%arg0: i32) -> (i32, i32, i32) {
    %c0_i32 = arith.constant 0 : i32
    %c0_i32_0 = arith.constant 0 : i32
    %c0_i32_1 = arith.constant 0 : i32
    return %arg0, %c0_i32, %c0_i32_0 : i32, i32, i32
  }
}

</mosaic_0001>

<bundles_post_ra>
// kernel: tpu_custom_call.1
= control target key start
LH: loop header
LB: loop body
LE: loop exit
PB: predicated region body
PF: predicated region fallthrough
CT: control target
= control target key end

     0   :  { %7 = vsyncpa [#allocation3], 0  ;;  %s644_s0 = inlined_call_operand.hbm [shape: f32[2,4,256], index: 0, kind: input, shape index: {}]   ;;  %s645_s1 = inlined_call_operand.hbm [shape: f32[4,256], index: 1, kind: input, shape index: {}]   ;;  %s646_s2 = inlined_call_operand.hbm [shape: f32[2,1,4], index: 2, kind: output, shape index: {}]  }
   0x1   :  { %9 = vsyncpa [#allocation3 + $0x1], 0 }
   0x2   :  { %10 = vsyncpa [#allocation6], 0 }
   0x3   :  { %11 = vsyncpa [#allocation4], 0 }
   0x4   :  { %13 = vsyncpa [#allocation4 + $0x1], 0  ;;  %s505_s9 = smov 0   ;;  %s507_s10 = smov 0  }
   0x5   :  { %s509_s11 = smov 0   ;;  %s511_s12 = smov 0  }
   0x6 LB: > { %s526_s13 = sadd.s32 4294967295, %s487_s12   ;;  %s287_s14 = sadd.s32 4294967294, %s487_s12   ;;  %s487_s12 = sphi %s511_s12, %s656_s12   ;;  %s483_s11 = sphi %s509_s11, %s655_s11   ;;  %s479_s10 = sphi %s507_s10, %s654_s10   ;;  %s475_s9 = sphi %s505_s9, %s653_s9  }
   0x7   : > { %p39_p0 = scmp.ne.s32.totalorder %s479_s10, %s475_s9  ;;  %p40_p1 = scmp.eq.s32.totalorder %s526_s13, 0 }
   0x8   : > { %p84_p2 = scmp.eq.s32.totalorder %s526_s13, 1  ;;  %p90_p3 = scmp.eq.s32.totalorder %s287_s14, 1 }
   0x9   : > { %p535_p4 = por %p40_p1, %p39_p0  ;;  %p288_p5 = scmp.ge.s32.totalorder %s487_s12, 1 }
   0xa   : > { %p540_p6 = por %p90_p3, %p39_p0  ;;  %p97_p7 = scmp.lt.s32.totalorder %s487_s12, 3 }
   0xb   : > { %s109_s19 = sshll.u32 %s645_s1, 4  ;;  %s489_s21 = smov [#allocation5]   ;;  %s110_s19 = int_to_ptr.hbm [resolvable:$true] %s109_s19 }
   0xc   : > { %p548_p8 = pnand %p288_p5, %p97_p7  ;;  %s111_s22 = sshll.u32 %s489_s21, 4  ;;  %s112_s22 = int_to_ptr.vmem [resolvable:$true] %s111_s22 }
   0xd   : > { %s558_s23 = sadd.s32 1, %s487_s12   ;;  %s26_s24 = sadd.s32 1, %s483_s11 }
   0xe   : > { %p308_p10 = pneg %p548_p8  ;;  %s23_s25 = ssub.s32 %s487_s12, %s558_s23 }
   0xf   : > { %p24_p12 = scmp.eq.s32.totalorder %s23_s25, 0  ;;  %p33_p13 = scmp.ne.s32.totalorder %s483_s11, %s479_s10 }
  0x10   : > { %p309_p11 = pnand %p308_p10, %p40_p1  ;;  %p34_p0 = scmp.eq.s32.totalorder %s487_s12, 0 }
  0x11   : > { %s567_s26 = scalar_select %p24_p12, %s483_s11, %s26_s24  }
  0x12   : > { %311 = dma.hbm_to_vmem [thread:$0]  (!%p309_p11), %s110_s19, 128, %s112_s22, [#allocation6]  }
  0x13   : > { %p571_p3 = por %p84_p2, %p33_p13  ;;  %p321_p5 = scmp.lt.s32.totalorder %s487_s12, 2 }
  0x14   : > { %s122_s28 = sand.u32 1, %s483_s11   ;;  %s299_s29 = sshll.u32 %s487_s12, 3 }
  0x15   : > { %p35_p7 = por %p34_p0, %p33_p13  ;;  %s291_s30 = sshll.u32 %s122_s28, 3 }
  0x16   : > { %s131_s5 = scalar_lea.hbm %s644_s0, %s299_s29  ;;  %s126_s7 = scalar_lea.vmem [#allocation2], %s291_s30 }
  0x17   : > { %s133_s6 = sshll.u32 %s131_s5, 4  ;;  %s135_s8 = sshll.u32 %s126_s7, 4  ;;  %s134_s6 = int_to_ptr.hbm [resolvable:$true] %s133_s6  ;;  %s136_s8 = int_to_ptr.vmem [resolvable:$true] %s135_s8 }
  0x18   : > { %p581_p10 = pnand %p321_p5, %p35_p7  ;;  %s123_s17 = scalar_lea.sflag [#allocation3], %s122_s28 }
  0x19   : > { %s387_s18 = sshra.s32 %s134_s6, 4  ;;  %s394_s24 = scalar_lea.hbm %s644_s0, 16  ;;  %s388_s18 = int_to_ptr.hbm [resolvable:$true] %s387_s18 }
  0x1a   : > { %s389_s19 = scalar_lea.hbm %s388_s18, 8  ;;  %p391_p11 = pneg %p581_p10 }
  0x1b   : > { %p390_p2 = scmp.ne.s32.totalorder %s388_s18, %s389_s19  ;;  %p395_p0 = scmp.lt.s32.totalorder %s388_s18, %s644_s0 }
  0x1c   : > { %p396_p5 = scmp.lt.s32.totalorder %s394_s24, %s389_s19 }
  0x1d   : > { %p392_p12 = pnand %p391_p11, %p390_p2 }
  0x1e   : > { %p397_p7 = por %p396_p5, %p395_p0 }
  0x1f   : > { %p393_p13 = pneg %p392_p12 }
  0x21   : > { %p398_p9 = pnand %p397_p7, %p393_p13 }
  0x23   : > { %401 = shalt.err (!%p398_p9)
}
  0x24   : > { %315 = dma.hbm_to_vmem [thread:$0]  (!%p581_p10), %s134_s6, 128, %s136_s8, %s123_s17  }
  0x25   : > { %144 = sbr.rel (%p548_p8) target bundleno = 180 (0xb4), region = 28  ;;  %s598_s28 = sand.u32 (!%p548_p8), 1, %s479_s10  }
  0x26   : > { %s295_s30 = sshll.u32 (!%p548_p8), %s598_s28, 3  ;;  %s147_s3 = scalar_lea.sflag (!%p548_p8), [#allocation3], %s598_s28 }
  0x27   : > { %s150_s4 = scalar_lea.vmem (!%p548_p8), [#allocation2], %s295_s30 }
  0x2a   : > { %462 = dma.done.wait (%p535_p4), %s147_s3, 128  }
  0x2b   : > { %464 = vsyncadd (%p535_p4), %s147_s3, 4294967168 }
  0x2c   : > { %466 = dma.done.wait (%p40_p1), [#allocation6], 128  }
  0x2d   : > { %468 = vsyncadd (%p40_p1), [#allocation6], 4294967168  ;;  %v176_v0 = vld [vmem:[%s150_s4] sm:$0xff]  ;;  %v177_v1 = vld [vmem:[#allocation5] sm:$0xff]  ;;  %vm185_vm0 = vcmask 1043456   ;;  %v192_v8 = vlaneseq  ;;  %s207_s5 = scalar_lea.hbm %s646_s2, %s526_s13  ;;  %s175_s6 = scalar_lea.vmem [#allocation7], %s598_s28 }
  0x2e   : > { %v178_v2 = vmul.f32 %v177_v1, %v176_v0  ;;  %s209_s7 = sshll.u32 %s175_s6, 4  ;;  %s211_s8 = sshll.u32 %s207_s5, 4  ;;  %vm196_vm1 = vcmask 24576   ;;  %s210_s7 = int_to_ptr.vmem [resolvable:$true] %s209_s7  ;;  %s212_s8 = int_to_ptr.hbm [resolvable:$true] %s211_s8 }
  0x2f   : > { %v193_v9 = vand.u32 127, %v192_v8  ;;  %s199_s14 = scalar_lea.sflag [#allocation4], %s598_s28  ;;  %s431_s17 = sshra.s32 %s212_s8, 4  ;;  %s432_s17 = int_to_ptr.hbm [resolvable:$true] %s431_s17 }
  0x30   : > { %180 = vst [vmem:[#allocation1] ss:$2 sm:$0xff] %v178_v2  ;;  %s433_s18 = scalar_lea.hbm %s432_s17, 1  ;;  %s437_s21 = scalar_lea.hbm %s646_s2, 2 }
  0x31   : > { %p434_p1 = scmp.ne.s32.totalorder %s432_s17, %s433_s18  ;;  %p438_p9 = scmp.lt.s32.totalorder %s432_s17, %s646_s2 }
  0x32   : > { %p439_p10 = scmp.lt.s32.totalorder %s437_s21, %s433_s18 }
  0x33   : > { %p435_p4 = pnand %p434_p1, %p571_p3 }
  0x34   : > { %p440_p2 = por %p439_p10, %p438_p9 }
  0x35   : > { %p436_p8 = pneg %p435_p4 }
  0x37   : > { %v181_v3 = vld.sshfl [vmem:[#allocation1] sm:$0xff pattern:$0x75316420]  ;;  %v182_v4 = vld.sshfl [vmem:[#allocation1 + $0x8] sm:$0xff pattern:$0x75316420]  ;;  %p441_p11 = pnand %p440_p2, %p436_p8 }
  0x38   : > { %v186_v5 = vsel %vm185_vm0, %v181_v3, 0.0  ;;  %v187_v6 = vsel %vm185_vm0, %v182_v4, 0.0 }
  0x39   : > { %v188_v7 = vadd.f32 %v187_v6, %v186_v5 }
  0x3b   : > { %189 = vadd.xlane.f32.xlu0 %v188_v7 }
  0xae   : > { %v190_v10 = vpop.xlane.xlu0 %189 }
  0xaf   : > { %v194_v11 = vperm.slane %v190_v10, %v193_v9 }
  0xb1   : > { %197 = vst.msk [vmem:[%s175_s6] sm:$0x1] %vm196_vm1, %v194_v11 }
  0xb2   : > { %444 = shalt.err (!%p441_p11)
}
  0xb3   : > { %306 = dma.vmem_to_hbm [thread:$0]  (%p571_p3), %s210_s7, 16, %s212_s8, %s199_s14  }
  0xb4 PF: > { %s223_s25 = sand.u32 1, %s475_s9   ;;  %p652_p12 = scmp.ge.s32.totalorder %s487_s12, 2 }
  0xb5   : > { %s224_s29 = scalar_lea.sflag [#allocation4], %s223_s25 }
  0xb6   : > { %p317_p13 = pnand %p652_p12, %p540_p6 }
  0xb8   : > { %p318_p0 = pneg %p317_p13 }
  0xba   : > { %470 = dma.done.wait (%p318_p0), %s224_s29, 16  }
  0xbb   : > { %472 = vsyncadd (%p318_p0), %s224_s29, 4294967280  ;;  %p16_p5 = scmp.ge.s32.totalorder %s558_s23, 4   ;;  %s653_s9 = smov %s479_s10 }
  0xbc   : > { %s654_s10 = smov %s483_s11  ;;  %s655_s11 = smov %s567_s26 }
  0xbd   : > { %s656_s12 = smov %s558_s23  ;;  %18 = sbr.rel (!%p16_p5) target bundleno = 6 (0x6), region = 77 }
  0xc2   :  { %229 = vsyncpa [#allocation3], 1 }
  0xc3   :  { %231 = vsyncpa [#allocation3 + $0x1], 1 }
  0xc4   :  { %232 = vsyncpa [#allocation6], 1 }
  0xc5   :  { %233 = vsyncpa [#allocation4], 1 }
  0xc6   :  { %235 = vsyncpa [#allocation4 + $0x1], 1 }

</bundles_post_ra>
